<compile_context>
chip_gen: v5e
topology: v5e:2x2
jax: 0.10.0
libtpu: 0.0.40
codegen_flags: <defaults>
</compile_context>

<pallas_src>
import jax
import jax.numpy as jnp
from jax.experimental import pallas as pl
from jax.experimental.pallas import tpu as pltpu

LEAKY_SLOPE = 0.01      # nn.LeakyReLU() default
BN_EPS = 1e-5           # nn.BatchNorm2d default


def _round_up(x, m):
    return (x + m - 1) // m * m


def _pick_tile(dim, preferred, align):
    if dim >= preferred:
        return preferred
    return max(align, _round_up(dim, align))


def _preferred_m_tile():
    """v5e has a 128-row MXU; v6e/v7x have 256x256 MXUs."""
    try:
        kind = jax.devices()[0].device_kind.lower()
        if "v5" in kind:
            return 128
    except Exception:
        pass
    return 256


# ----------------------------------------------------------------------------
# Fused kernel: one (tm, tn) output tile; K (last grid axis) accumulates
# directly into the resident f32 output block. Epilogue (+shift, LeakyReLU)
# on the final K step.
# ----------------------------------------------------------------------------
def _fused_conv_matmul_kernel(a_ref, b_ref, shift_ref, o_ref):
    k = pl.program_id(2)

    @pl.when(k == 0)
    def _():
        o_ref[...] = jnp.zeros_like(o_ref)

    o_ref[...] += jnp.dot(a_ref[...], b_ref[...],
                          preferred_element_type=jnp.float32)

    @pl.when(k == pl.num_programs(2) - 1)
    def _():
        y = o_ref[...] + shift_ref[...]
        o_ref[...] = jnp.where(y >= 0, y, LEAKY_SLOPE * y)


def fused_matmul_bn_lrelu(a, b, shift, *, tm=None, tn=256, tk=256):
    """a: [M, K], b: [K, N], shift: [N]. Returns leaky_relu(a @ b + shift), f32."""
    M, K = a.shape
    K2, N = b.shape
    assert K == K2, (K, K2)

    if tm is None:
        tm = _preferred_m_tile()
    tm = _pick_tile(M, tm, 16)     # 16: bf16 sublane packing of the A operand
    tn = _pick_tile(N, tn, 128)
    tk = _pick_tile(K, tk, 128)
    Mp, Kp, Np = _round_up(M, tm), _round_up(K, tk), _round_up(N, tn)

    a = jnp.pad(a, ((0, Mp - M), (0, Kp - K))).astype(jnp.bfloat16)
    b = jnp.pad(b, ((0, Kp - K), (0, Np - N))).astype(jnp.bfloat16)
    shift = jnp.pad(shift, (0, Np - N)).reshape(1, Np).astype(jnp.float32)

    grid = (Mp // tm, Np // tn, Kp // tk)   # K last: output tile stays resident

    out = pl.pallas_call(
        _fused_conv_matmul_kernel,
        out_shape=jax.ShapeDtypeStruct((Mp, Np), jnp.float32),
        grid_spec=pltpu.PrefetchScalarGridSpec(
            num_scalar_prefetch=0,
            grid=grid,
            in_specs=[
                pl.BlockSpec((tm, tk), lambda i, j, k: (i, k)),
                pl.BlockSpec((tk, tn), lambda i, j, k: (k, j)),
                pl.BlockSpec((1, tn), lambda i, j, k: (0, j)),
            ],
            out_specs=pl.BlockSpec((tm, tn), lambda i, j, k: (i, j)),
        ),
        compiler_params=pltpu.CompilerParams(
            dimension_semantics=("parallel", "parallel", "arbitrary"),
        ),
    )(a, b, shift)

    if Mp != M or Np != N:
        out = out[:M, :N]
    return out


# ----------------------------------------------------------------------------
# DownSample forward: reflect-pad + im2col (JAX glue) + fused Pallas matmul.
# ----------------------------------------------------------------------------
def downsample_conv(x_nhwc, w, bias, bn_scale, bn_shift):
    """3x3 / stride-2 / reflect-pad-1 conv, folded BN, LeakyReLU. NHWC."""
    N, H, W, Cin = x_nhwc.shape
    Cout = w.shape[0]
    xp = jnp.pad(x_nhwc, ((0, 0), (1, 1), (1, 1), (0, 0)), mode="reflect")
    Hout = (H - 1) // 2 + 1
    Wout = (W - 1) // 2 + 1

    # im2col, K ordered (di, dj, cin) to match the flattened weights below.
    cols = []
    for di in range(3):
        for dj in range(3):
            cols.append(xp[:, di:di + 2 * Hout - 1:2, dj:dj + 2 * Wout - 1:2, :])
    a = jnp.concatenate(cols, axis=-1).reshape(N * Hout * Wout, 9 * Cin)

    wmat = jnp.transpose(w, (2, 3, 1, 0)).reshape(9 * Cin, Cout)
    # Fold BN scale into the weights; bias + BN shift into one vector.
    wmat = wmat * bn_scale[None, :]
    shift = bias * bn_scale + bn_shift

    y = fused_matmul_bn_lrelu(a, wmat, shift)
    return y.reshape(N, Hout, Wout, Cout)


def downsample_forward(params, x_nchw):
    bn = params["bn"]
    scale = bn["gamma"] / jnp.sqrt(bn["running_var"] + BN_EPS)
    shift = bn["beta"] - bn["running_mean"] * scale
    x = jnp.transpose(x_nchw, (0, 2, 3, 1))          # NCHW -> NHWC
    y = downsample_conv(x, params["w"], params["b"], scale, shift)
    return jnp.transpose(y, (0, 3, 1, 2))            # NHWC -> NCHW


# ----------------------------------------------------------------------------
# Deterministic parameter init (shapes match the PyTorch module).
# ----------------------------------------------------------------------------
def init_downsample(key, channel):
    kw, kb, kg, kbeta = jax.random.split(key, 4)
    fan_in = channel * 9
    w = jax.random.normal(kw, (channel, channel, 3, 3), jnp.float32) / jnp.sqrt(fan_in)
    # NOTE: bias='False' is a truthy string in the PyTorch reference -> bias=True.
    bias = 0.01 * jax.random.normal(kb, (channel,), jnp.float32)
    bn = {"gamma": 1.0 + 0.1 * jax.random.normal(kg, (channel,), jnp.float32),
          "beta": 0.1 * jax.random.normal(kbeta, (channel,), jnp.float32),
          "running_mean": jnp.zeros((channel,), jnp.float32),
          "running_var": jnp.ones((channel,), jnp.float32)}
    return {"w": w, "b": bias, "bn": bn}


# ----------------------------------------------------------------------------
# Plain-JAX reference (for a loose numerical cross-check; bf16 MXU operands).
# ----------------------------------------------------------------------------
def _reference(params, x_nchw):
    bn = params["bn"]
    scale = bn["gamma"] / jnp.sqrt(bn["running_var"] + BN_EPS)
    shift = bn["beta"] - bn["running_mean"] * scale
    xp = jnp.pad(x_nchw, ((0, 0), (0, 0), (1, 1), (1, 1)), mode="reflect")
    y = jax.lax.conv_general_dilated(
        xp, params["w"], window_strides=(2, 2), padding="VALID",
        dimension_numbers=("NCHW", "OIHW", "NCHW"))
    y = y + params["b"][None, :, None, None]
    y = y * scale[None, :, None, None] + shift[None, :, None, None]
    return jnp.where(y >= 0, y, LEAKY_SLOPE * y)


if __name__ == "__main__":
    key = jax.random.PRNGKey(0)
    pkey, xkey = jax.random.split(key)

    CH, HW, BATCH = 128, 16, 2
    params = init_downsample(pkey, CH)
    x = jax.random.normal(xkey, (BATCH, CH, HW, HW), jnp.float32)

    fwd = jax.jit(downsample_forward)
    y = jax.block_until_ready(fwd(params, x))

    assert y.shape == (BATCH, CH, HW // 2, HW // 2), y.shape
    assert bool(jnp.all(jnp.isfinite(y)))

    y_ref = _reference(params, x)
    max_err = float(jnp.max(jnp.abs(y - y_ref)))
    assert max_err < 0.1, f"max abs error vs reference: {max_err}"

    print("KERNEL_OK")
</pallas_src>

<mosaic_0001>
module attributes {stable_mosaic.version = 11 : i64} {
  func.func @_fused_conv_matmul_kernel(%arg0: i32, %arg1: i32, %arg2: i32, %arg3: memref<128x256xbf16, #tpu.memory_space<vmem>>, %arg4: memref<256x128xbf16, #tpu.memory_space<vmem>>, %arg5: memref<1x128xf32, #tpu.memory_space<vmem>>, %arg6: memref<128x128xf32, #tpu.memory_space<vmem>>) attributes {dimension_semantics = [#tpu.dimension_semantics<parallel>, #tpu.dimension_semantics<parallel>, #tpu.dimension_semantics<arbitrary>], iteration_bounds = array<i64: 1, 1, 5>, scalar_prefetch = 0 : i64, scratch_operands = 0 : i64, tpu.core_type = #tpu.core_type<tc>, window_params = [{transform_indices = @transform_0, window_bounds = array<i64: 128, 256>}, {transform_indices = @transform_1, window_bounds = array<i64: 256, 128>}, {transform_indices = @transform_2, window_bounds = array<i64: 1, 128>}, {transform_indices = @transform_3, window_bounds = array<i64: 128, 128>}]} {
    %c0_i32 = arith.constant 0 : i32
    %0 = arith.cmpi eq, %arg2, %c0_i32 : i32
    %1 = arith.extui %0 : i1 to i32
    %c0_i32_0 = arith.constant 0 : i32
    %2 = arith.cmpi ne, %1, %c0_i32_0 : i32
    scf.if %2 {
      %cst_9 = arith.constant 0.000000e+00 : f32
      %12 = vector.broadcast %cst_9 : f32 to vector<128x128xf32>
      %c0_10 = arith.constant 0 : index
      %c0_11 = arith.constant 0 : index
      %13 = vector.load %arg6[%c0_10, %c0_11] : memref<128x128xf32, #tpu.memory_space<vmem>>, vector<128x128xf32>
      tpu.vector_store %arg6[%c0_10, %c0_11], %12 {strides = array<i32>} : memref<128x128xf32, #tpu.memory_space<vmem>>, vector<128x128xf32>,
    } else {
    }
    %c0 = arith.constant 0 : index
    %c0_1 = arith.constant 0 : index
    %3 = vector.load %arg6[%c0, %c0_1] : memref<128x128xf32, #tpu.memory_space<vmem>>, vector<128x128xf32>
    %c0_2 = arith.constant 0 : index
    %c0_3 = arith.constant 0 : index
    %4 = vector.load %arg3[%c0_2, %c0_3] : memref<128x256xbf16, #tpu.memory_space<vmem>>, vector<128x256xbf16>
    %c0_4 = arith.constant 0 : index
    %c0_5 = arith.constant 0 : index
    %5 = vector.load %arg4[%c0_4, %c0_5] : memref<256x128xbf16, #tpu.memory_space<vmem>>, vector<256x128xbf16>
    %cst = arith.constant dense<0.000000e+00> : vector<128x128xf32>
    %6 = tpu.matmul %4, %5, %cst {dimension_numbers = #tpu.dot_dimension_numbers<[1], [0], [0], [1], [0, 0, 1, 1], [], []>} : vector<128x256xbf16>, vector<256x128xbf16>, vector<128x128xf32> -> vector<128x128xf32>
    %7 = arith.addf %3, %6 : vector<128x128xf32>
    %c0_6 = arith.constant 0 : index
    %c0_7 = arith.constant 0 : index
    %8 = vector.load %arg6[%c0_6, %c0_7] : memref<128x128xf32, #tpu.memory_space<vmem>>, vector<128x128xf32>
    tpu.vector_store %arg6[%c0_6, %c0_7], %7 {strides = array<i32>} : memref<128x128xf32, #tpu.memory_space<vmem>>, vector<128x128xf32>,
    %c4_i32 = arith.constant 4 : i32
    %9 = arith.cmpi eq, %arg2, %c4_i32 : i32
    %10 = arith.extui %9 : i1 to i32
    %c0_i32_8 = arith.constant 0 : i32
    %11 = arith.cmpi ne, %10, %c0_i32_8 : i32
    scf.if %11 {
      %c0_9 = arith.constant 0 : index
      %c0_10 = arith.constant 0 : index
      %12 = vector.load %arg6[%c0_9, %c0_10] : memref<128x128xf32, #tpu.memory_space<vmem>>, vector<128x128xf32>
      %c0_11 = arith.constant 0 : index
      %c0_12 = arith.constant 0 : index
      %13 = vector.load %arg5[%c0_11, %c0_12] : memref<1x128xf32, #tpu.memory_space<vmem>>, vector<1x128xf32>
      %14 = vector.broadcast %13 : vector<1x128xf32> to vector<128x128xf32>
      %15 = arith.addf %12, %14 : vector<128x128xf32>
      %cst_13 = arith.constant 0.000000e+00 : f32
      %16 = vector.broadcast %cst_13 : f32 to vector<128x128xf32>
      %17 = arith.cmpf oge, %15, %16 : vector<128x128xf32>
      %cst_14 = arith.constant 0.00999999977 : f32
      %18 = vector.broadcast %cst_14 : f32 to vector<128x128xf32>
      %19 = arith.mulf %18, %15 : vector<128x128xf32>
      %20 = arith.select %17, %15, %19 : vector<128x128xi1>, vector<128x128xf32>
      %c0_15 = arith.constant 0 : index
      %c0_16 = arith.constant 0 : index
      %21 = vector.load %arg6[%c0_15, %c0_16] : memref<128x128xf32, #tpu.memory_space<vmem>>, vector<128x128xf32>
      tpu.vector_store %arg6[%c0_15, %c0_16], %20 {strides = array<i32>} : memref<128x128xf32, #tpu.memory_space<vmem>>, vector<128x128xf32>,
    } else {
    }
    return
  }
  func.func @transform_0(%arg0: i32, %arg1: i32, %arg2: i32) -> (i32, i32) {
    %c0_i32 = arith.constant 0 : i32
    return %arg0, %arg2 : i32, i32
  }
  func.func @transform_1(%arg0: i32, %arg1: i32, %arg2: i32) -> (i32, i32) {
    %c0_i32 = arith.constant 0 : i32
    return %arg2, %arg1 : i32, i32
  }
  func.func @transform_2(%arg0: i32, %arg1: i32, %arg2: i32) -> (i32, i32) {
    %c0_i32 = arith.constant 0 : i32
    %c0_i32_0 = arith.constant 0 : i32
    return %c0_i32, %arg1 : i32, i32
  }
  func.func @transform_3(%arg0: i32, %arg1: i32, %arg2: i32) -> (i32, i32) {
    %c0_i32 = arith.constant 0 : i32
    return %arg0, %arg1 : i32, i32
  }
}

</mosaic_0001>

<bundles_post_ra>
// kernel: downsample_forward.1
= control target key start
LH: loop header
LB: loop body
LE: loop exit
PB: predicated region body
PF: predicated region fallthrough
CT: control target
= control target key end

     0   :  { %8 = vsyncpa [#allocation4], 0  ;;  %s1275_s12 = smov 0   ;;  %s1277_s13 = smov 0   ;;  %s1439_s0 = inlined_call_operand.vmem [shape: bf16[128,1280], index: 0, kind: input, shape index: {}]   ;;  %s1440_s1 = inlined_call_operand.vmem [shape: bf16[1280,128], index: 1, kind: input, shape index: {}]   ;;  %s1441_s2 = inlined_call_operand.vmem [shape: f32[1,128], index: 2, kind: input, shape index: {}]   ;;  %s1442_s3 = inlined_call_operand.hbm [shape: f32[128,128], index: 3, kind: output, shape index: {}]  }
   0x1   :  { %s1279_s14 = smov 0   ;;  %s1281_s15 = smov 0  }
   0x2   :  { %s1283_s16 = smov 0  }
   0x3 LB: > { %s934_s17 = sadd.s32 4294967295, %s1249_s16   ;;  %s26_s18 = sadd.s32 1, %s1245_s15  ;;  %s1249_s16 = sphi %s1283_s16, %s14_s16   ;;  %s1245_s15 = sphi %s1281_s15, %s1446_s15   ;;  %s1241_s14 = sphi %s1279_s14, %s1445_s14   ;;  %s1237_s13 = sphi %s1277_s13, %s1444_s13   ;;  %s1233_s12 = sphi %s1275_s12, %s1443_s12  }
   0x4   : > { %p27_p0 = scmp.ge.s32.totalorder %s26_s18, 5  ;;  %p49_p1 = scmp.ne.s32.totalorder %s1237_s13, %s1233_s12 }
   0x5   : > { %p50_p2 = scmp.eq.s32.totalorder %s1249_s16, 0  ;;  %s42_s20 = sadd.s32 1, %s1237_s13 }
   0x6   : > { %s1448_s18 = smov (%p27_p0, %s26_s18), 0  ;;  %p937_p5 = scmp.ge.s32.totalorder %s1249_s16, 5 }
   0x7   : > { %p51_p3 = por %p50_p2, %p49_p1  ;;  %s38_s19 = ssub.s32 %s1245_s15, %s1448_s18 }
   0x8   : > { %p40_p4 = scmp.eq.s32.totalorder %s38_s19, 0  ;;  %163 = sbr.rel (%p937_p5) target bundleno = 33 (0x21), region = 20 }
   0xa   : > { %s1311_s21 = scalar_select %p40_p4, %s1237_s13, %s42_s20  }
   0xd   : > { %166 = sbr.rel (!%p51_p3) target bundleno = 33 (0x21), region = 24  ;;  %s168_s22 = sand.u32 (%p51_p3), 1, %s1237_s13  }
   0xe   : > { %s1079_s23 = sshll.u32 (%p51_p3), %s1245_s15, 3  ;;  %s938_s24 = sshll.u32 (%p51_p3), %s168_s22, 7 }
   0xf   : > { %s1319_s27 = scalar_lea.vmem (%p51_p3), %s1439_s0, %s1079_s23  ;;  %s170_s28 = scalar_lea.vmem (%p51_p3), [#allocation2], %s938_s24 }
  0x10   : > { %v235_v0 = vld [vmem:[%s1319_s27] sm:$0xff] (%p51_p3)  ;;  %v237_v1 = vld [vmem:[%s1319_s27 + $0x28] sm:$0xff] (%p51_p3)  ;;  %v239_v2 = vld [vmem:[%s1319_s27 + $0x50] sm:$0xff] (%p51_p3) }
  0x11   : > { %236 = vst [vmem:[%s170_s28] sm:$0xff] (%p51_p3), %v235_v0  ;;  %v241_v3 = vld [vmem:[%s1319_s27 + $0x78] sm:$0xff] (%p51_p3)  ;;  %v243_v4 = vld [vmem:[%s1319_s27 + $0xa0] sm:$0xff] (%p51_p3)  ;;  %v245_v5 = vld [vmem:[%s1319_s27 + $0xc8] sm:$0xff] (%p51_p3) }
  0x12   : > { %238 = vst [vmem:[%s170_s28 + $0x8] sm:$0xff] %v237_v1  ;;  %v247_v6 = vld [vmem:[%s1319_s27 + $0xf0] sm:$0xff]  ;;  %v249_v7 = vld [vmem:[%s1319_s27 + $0x118] sm:$0xff]  ;;  %v251_v8 = vld [vmem:[%s1319_s27 + $0x140] sm:$0xff] }
  0x13   : > { %240 = vst [vmem:[%s170_s28 + $0x10] sm:$0xff] %v239_v2  ;;  %v253_v9 = vld [vmem:[%s1319_s27 + $0x168] sm:$0xff]  ;;  %v255_v10 = vld [vmem:[%s1319_s27 + $0x190] sm:$0xff]  ;;  %v257_v11 = vld [vmem:[%s1319_s27 + $0x1b8] sm:$0xff] }
  0x14   : > { %242 = vst [vmem:[%s170_s28 + $0x18] sm:$0xff] %v241_v3  ;;  %v259_v12 = vld [vmem:[%s1319_s27 + $0x1e0] sm:$0xff]  ;;  %v261_v13 = vld [vmem:[%s1319_s27 + $0x208] sm:$0xff]  ;;  %v263_v14 = vld [vmem:[%s1319_s27 + $0x230] sm:$0xff] }
  0x15   : > { %244 = vst [vmem:[%s170_s28 + $0x20] sm:$0xff] %v243_v4  ;;  %v265_v15 = vld [vmem:[%s1319_s27 + $0x258] sm:$0xff] }
  0x16   : > { %246 = vst [vmem:[%s170_s28 + $0x28] sm:$0xff] %v245_v5 }
  0x17   : > { %248 = vst [vmem:[%s170_s28 + $0x30] sm:$0xff] %v247_v6 }
  0x18   : > { %250 = vst [vmem:[%s170_s28 + $0x38] sm:$0xff] %v249_v7 }
  0x19   : > { %252 = vst [vmem:[%s170_s28 + $0x40] sm:$0xff] %v251_v8 }
  0x1a   : > { %254 = vst [vmem:[%s170_s28 + $0x48] sm:$0xff] %v253_v9 }
  0x1b   : > { %256 = vst [vmem:[%s170_s28 + $0x50] sm:$0xff] %v255_v10 }
  0x1c   : > { %258 = vst [vmem:[%s170_s28 + $0x58] sm:$0xff] %v257_v11 }
  0x1d   : > { %260 = vst [vmem:[%s170_s28 + $0x60] sm:$0xff] %v259_v12 }
  0x1e   : > { %262 = vst [vmem:[%s170_s28 + $0x68] sm:$0xff] %v261_v13 }
  0x1f   : > { %264 = vst [vmem:[%s170_s28 + $0x70] sm:$0xff] %v263_v14 }
  0x20   : > { %266 = vst [vmem:[%s170_s28 + $0x78] sm:$0xff] %v265_v15 }
  0x21 PF: > { %p941_p6 = scmp.ge.s32.totalorder %s1249_s16, 1  ;;  %p283_p7 = scmp.lt.s32.totalorder %s1249_s16, 6 }
  0x23   : > { %p284_p8 = pnand %p941_p6, %p283_p7 }
  0x24   : > { %s290_s29 = sand.u32 (!%p284_p8), 1, %s1233_s12   ;;  %s943_s30 = sshll.u32 (!%p284_p8), %s1241_s14, 5 }
  0x25   : > { %287 = sbr.rel (%p284_p8) target bundleno = 319 (0x13f), region = 66  ;;  %s942_s4 = sshll.u32 (!%p284_p8), %s290_s29, 7 }
  0x26   : > { %p322_p9 = scmp.lt.s32.totalorder (!%p284_p8), %s943_s30, 159  ;;  %s1346_s9 = scalar_lea.vmem (!%p284_p8), [#allocation2], %s942_s4 }
  0x27   : > { %p945_p10 = scmp.ne.s32.totalorder (!%p284_p8), %s1241_s14, 0 }
  0x2a   : > { %s1450_s30 = smov (!%p322_p9, %s943_s30), 159  ;;  %337 = sbr.rel (%p945_p10) target bundleno = 64 (0x40), region = 74 }
  0x2b   : > { %s944_s5 = sshll.u32 %s1450_s30, 2 }
  0x2c   : > { %s1344_s8 = scalar_lea.vmem %s1440_s1, %s944_s5 }
  0x2f   : > { %v1251_v16 = vmov 0.0  }
  0x30   : > { %338 = vst [vmem:[#allocation3] sm:$0xff] %v1251_v16 }
  0x31   : > { %339 = vst [vmem:[#allocation3 + $0x8] sm:$0xff] %v1251_v16 }
  0x32   : > { %340 = vst [vmem:[#allocation3 + $0x10] sm:$0xff] %v1251_v16 }
  0x33   : > { %341 = vst [vmem:[#allocation3 + $0x18] sm:$0xff] %v1251_v16 }
  0x34   : > { %342 = vst [vmem:[#allocation3 + $0x20] sm:$0xff] %v1251_v16 }
  0x35   : > { %343 = vst [vmem:[#allocation3 + $0x28] sm:$0xff] %v1251_v16 }
  0x36   : > { %344 = vst [vmem:[#allocation3 + $0x30] sm:$0xff] %v1251_v16 }
  0x37   : > { %345 = vst [vmem:[#allocation3 + $0x38] sm:$0xff] %v1251_v16 }
  0x38   : > { %346 = vst [vmem:[#allocation3 + $0x40] sm:$0xff] %v1251_v16 }
  0x39   : > { %347 = vst [vmem:[#allocation3 + $0x48] sm:$0xff] %v1251_v16 }
  0x3a   : > { %348 = vst [vmem:[#allocation3 + $0x50] sm:$0xff] %v1251_v16 }
  0x3b   : > { %349 = vst [vmem:[#allocation3 + $0x58] sm:$0xff] %v1251_v16 }
  0x3c   : > { %350 = vst [vmem:[#allocation3 + $0x60] sm:$0xff] %v1251_v16 }
  0x3d   : > { %351 = vst [vmem:[#allocation3 + $0x68] sm:$0xff] %v1251_v16 }
  0x3e   : > { %352 = vst [vmem:[#allocation3 + $0x70] sm:$0xff] %v1251_v16 }
  0x3f   : > { %353 = vst [vmem:[#allocation3 + $0x78] sm:$0xff] %v1251_v16 }
  0x40 PF: > { %v1103_v17 = vld [vmem:[%s1344_s8 + $0x38] sm:$0xff]  ;;  %v1102_v19 = vld [vmem:[%s1344_s8 + $0x30] sm:$0xff]  ;;  %v1101_v21 = vld [vmem:[%s1344_s8 + $0x28] sm:$0xff]  ;;  %p1074_p11 = scmp.ne.s32.totalorder %s1241_s14, 4 }
  0x41   : > { %v1111_v18 = vld [vmem:[%s1344_s8 + $0x78] sm:$0xff]  ;;  %594 = vmatpush.bf16.msra.mxu0 %v1103_v17  ;;  %1112 = vmatpush.bf16.msra.mxu2 %v1103_v17  ;;  %v1110_v20 = vld [vmem:[%s1344_s8 + $0x70] sm:$0xff]  ;;  %v1109_v22 = vld [vmem:[%s1344_s8 + $0x68] sm:$0xff] }
  0x42   : > { %643 = vmatpush.bf16.msra.mxu1 %v1111_v18  ;;  %1120 = vmatpush.bf16.msra.mxu3 %v1111_v18  ;;  %v1100_v23 = vld [vmem:[%s1344_s8 + $0x20] sm:$0xff]  ;;  %v1099_v25 = vld [vmem:[%s1344_s8 + $0x18] sm:$0xff]  ;;  %v1098_v27 = vld [vmem:[%s1344_s8 + $0x10] sm:$0xff] }
  0x43   : > { %v1108_v24 = vld [vmem:[%s1344_s8 + $0x60] sm:$0xff]  ;;  %v1107_v26 = vld [vmem:[%s1344_s8 + $0x58] sm:$0xff]  ;;  %v1106_v28 = vld [vmem:[%s1344_s8 + $0x50] sm:$0xff] }
  0x44   : > { %v1097_v29 = vld [vmem:[%s1344_s8 + $0x8] sm:$0xff]  ;;  %v1096_v31 = vld [vmem:[%s1344_s8] sm:$0xff]  ;;  %v956_v45 = vld [vmem:[%s1346_s9 + $0x10] sm:$0xf] }
  0x45   : > { %595 = vmatpush.bf16.msra.mxu0 %v1102_v19  ;;  %1113 = vmatpush.bf16.msra.mxu2 %v1102_v19  ;;  %v1105_v30 = vld [vmem:[%s1344_s8 + $0x48] sm:$0xff]  ;;  %v1104_v32 = vld [vmem:[%s1344_s8 + $0x40] sm:$0xff]  ;;  %v1083_v46 = vld [vmem:[%s1346_s9 + $0x14] sm:$0xf0] }
  0x46   : > { %644 = vmatpush.bf16.msra.mxu1 %v1110_v20  ;;  %1121 = vmatpush.bf16.msra.mxu3 %v1110_v20  ;;  %v948_v33 = vld [vmem:[%s1346_s9] sm:$0xf]  ;;  %v1081_v34 = vld [vmem:[%s1346_s9 + $0x4] sm:$0xf0]  ;;  %v1080_v37 = vld [vmem:[%s1346_s9 + $0x4] sm:$0xf]  ;;  %v957_v53 = vor.u32 %v1083_v46, %v956_v45 }
  0x47   : > { %v980_v35 = vld [vmem:[%s1346_s9 + $0x40] sm:$0xf]  ;;  %v1089_v36 = vld [vmem:[%s1346_s9 + $0x44] sm:$0xf0]  ;;  %v950_v38 = vld [vmem:[%s1346_s9 + $0x8] sm:$0xf0]  ;;  %v949_v41 = vor.u32 %v1081_v34, %v948_v33 }
  0x48   : > { %v1088_v39 = vld [vmem:[%s1346_s9 + $0x44] sm:$0xf]  ;;  %v982_v40 = vld [vmem:[%s1346_s9 + $0x48] sm:$0xf0]  ;;  %v981_v42 = vor.u32 %v1089_v36, %v980_v35  ;;  %v953_v43 = vor.u32 %v1080_v37, %v950_v38  ;;  %v988_v47 = vld [vmem:[%s1346_s9 + $0x50] sm:$0xf] }
  0x49   : > { %596 = vmatpush.bf16.msra.mxu0 %v1101_v21  ;;  %1114 = vmatpush.bf16.msra.mxu2 %v1101_v21  ;;  %v985_v44 = vor.u32 %v1088_v39, %v982_v40  ;;  %v1091_v48 = vld [vmem:[%s1346_s9 + $0x54] sm:$0xf0]  ;;  %v1082_v49 = vld [vmem:[%s1346_s9 + $0x14] sm:$0xf]  ;;  %v958_v50 = vld [vmem:[%s1346_s9 + $0x18] sm:$0xf0] }
  0x4a   : > { %645 = vmatpush.bf16.msra.mxu1 %v1109_v22  ;;  %1122 = vmatpush.bf16.msra.mxu3 %v1109_v22  ;;  %v1090_v51 = vld [vmem:[%s1346_s9 + $0x54] sm:$0xf]  ;;  %v990_v52 = vld [vmem:[%s1346_s9 + $0x58] sm:$0xf0]  ;;  %v989_v54 = vor.u32 %v1091_v48, %v988_v47  ;;  %v961_v55 = vor.u32 %v1082_v49, %v958_v50  ;;  %v964_v57 = vld [vmem:[%s1346_s9 + $0x20] sm:$0xf] }
  0x4b   : > { %v993_v56 = vor.u32 %v1090_v51, %v990_v52  ;;  %v1085_v58 = vld [vmem:[%s1346_s9 + $0x24] sm:$0xf0]  ;;  %v996_v59 = vld [vmem:[%s1346_s9 + $0x60] sm:$0xf]  ;;  %v1084_v61 = vld [vmem:[%s1346_s9 + $0x24] sm:$0xf] }
  0x4c   : > { %v1093_v60 = vld [vmem:[%s1346_s9 + $0x64] sm:$0xf0]  ;;  %v966_v62 = vld [vmem:[%s1346_s9 + $0x28] sm:$0xf0]  ;;  %v1092_v63 = vld [vmem:[%s1346_s9 + $0x64] sm:$0xf]  ;;  %v965_v1 = vor.u32 %v1085_v58, %v964_v57 }
  0x4d   : > { %597 = vmatpush.bf16.msra.mxu0 %v1100_v23  ;;  %1115 = vmatpush.bf16.msra.mxu2 %v1100_v23  ;;  %v998_v0 = vld [vmem:[%s1346_s9 + $0x68] sm:$0xf0]  ;;  %v997_v2 = vor.u32 %v1093_v60, %v996_v59  ;;  %v969_v3 = vor.u32 %v1084_v61, %v966_v62  ;;  %v972_v5 = vld [vmem:[%s1346_s9 + $0x30] sm:$0xf]  ;;  %v1087_v6 = vld [vmem:[%s1346_s9 + $0x34] sm:$0xf0] }
  0x4e   : > { %646 = vmatpush.bf16.msra.mxu1 %v1108_v24  ;;  %1123 = vmatpush.bf16.msra.mxu3 %v1108_v24  ;;  %v1001_v4 = vor.u32 %v1092_v63, %v998_v0  ;;  %v1004_v7 = vld [vmem:[%s1346_s9 + $0x70] sm:$0xf]  ;;  %v1095_v8 = vld [vmem:[%s1346_s9 + $0x74] sm:$0xf0]  ;;  %v1086_v9 = vld [vmem:[%s1346_s9 + $0x34] sm:$0xf]  ;;  %v973_v13 = vor.u32 %v1087_v6, %v972_v5 }
  0x4f   : > { %v974_v10 = vld [vmem:[%s1346_s9 + $0x38] sm:$0xf0]  ;;  %v1094_v11 = vld [vmem:[%s1346_s9 + $0x74] sm:$0xf]  ;;  %v1005_v14 = vor.u32 %v1095_v8, %v1004_v7  ;;  %v354_v18 = vld [vmem:[#allocation3] sm:$0xff] }
  0x50   : > { %v1006_v12 = vld [vmem:[%s1346_s9 + $0x78] sm:$0xf0]  ;;  %v977_v15 = vor.u32 %v1086_v9, %v974_v10  ;;  %v362_v23 = vld [vmem:[#allocation3 + $0x40] sm:$0xff]  ;;  %v363_v33 = vld [vmem:[#allocation3 + $0x48] sm:$0xff] }
  0x51   : > { %598 = vmatpush.bf16.msra.mxu0 %v1099_v25  ;;  %1116 = vmatpush.bf16.msra.mxu2 %v1099_v25  ;;  %v1009_v16 = vor.u32 %v1094_v11, %v1006_v12  ;;  %v356_v37 = vld [vmem:[#allocation3 + $0x10] sm:$0xff]  ;;  %v357_v47 = vld [vmem:[#allocation3 + $0x18] sm:$0xff]  ;;  %v358_v57 = vld [vmem:[#allocation3 + $0x20] sm:$0xff] }
  0x52   : > { %647 = vmatpush.bf16.msra.mxu1 %v1107_v26  ;;  %1124 = vmatpush.bf16.msra.mxu3 %v1107_v26  ;;  %v366_v63 = vld [vmem:[#allocation3 + $0x60] sm:$0xff]  ;;  %v367_v9 = vld [vmem:[#allocation3 + $0x68] sm:$0xff] }
  0x55   : > { %599 = vmatpush.bf16.msra.mxu0 %v1098_v27  ;;  %1117 = vmatpush.bf16.msra.mxu2 %v1098_v27  ;;  %v355_v27 = vld [vmem:[#allocation3 + $0x8] sm:$0xff] }
  0x56   : > { %648 = vmatpush.bf16.msra.mxu1 %v1106_v28  ;;  %1125 = vmatpush.bf16.msra.mxu3 %v1106_v28 }
  0x59   : > { %600 = vmatpush.bf16.msra.mxu0 %v1097_v29  ;;  %1118 = vmatpush.bf16.msra.mxu2 %v1097_v29 }
  0x5a   : > { %649 = vmatpush.bf16.msra.mxu1 %v1105_v30  ;;  %1126 = vmatpush.bf16.msra.mxu3 %v1105_v30 }
  0x5d   : > { %601 = vmatpush.bf16.msra.mxu0 %v1096_v31  ;;  %1119 = vmatpush.bf16.msra.mxu2 %v1096_v31 }
  0x5e   : > { %650 = vmatpush.bf16.msra.mxu1 %v1104_v32  ;;  %1127 = vmatpush.bf16.msra.mxu3 %v1104_v32 }
  0x60   : > { %602 = vmatmul.bf16.vlgmr.msra.gmra.mxu0 %v949_v41  ;;  %622 = vmatmul.bf16.vlgmr.msra.gmra.mxu2 %v981_v42 }
  0x61   : > { %651 = vmatmul.bf16.vlgmr.msra.gmra.mxu1 %v953_v43  ;;  %671 = vmatmul.bf16.vlgmr.msra.gmra.mxu3 %v985_v44  ;;  %v364_v43 = vld [vmem:[#allocation3 + $0x50] sm:$0xff] }
  0x70   : > { %607 = vmatmul.bf16.gmra.mxu0 %v957_v53  ;;  %627 = vmatmul.bf16.gmra.mxu2 %v989_v54  ;;  %v365_v53 = vld [vmem:[#allocation3 + $0x58] sm:$0xff] }
  0x71   : > { %656 = vmatmul.bf16.gmra.mxu1 %v961_v55  ;;  %676 = vmatmul.bf16.gmra.mxu3 %v993_v56 }
  0x80   : > { %612 = vmatmul.bf16.gmra.mxu0 %v965_v1  ;;  %632 = vmatmul.bf16.gmra.mxu2 %v997_v2 }
  0x81   : > { %661 = vmatmul.bf16.gmra.mxu1 %v969_v3  ;;  %681 = vmatmul.bf16.gmra.mxu3 %v1001_v4  ;;  %v359_v3 = vld [vmem:[#allocation3 + $0x28] sm:$0xff] }
  0x90   : > { %617 = vmatmul.bf16.gmra.mxu0 %v973_v13  ;;  %637 = vmatmul.bf16.gmra.mxu2 %v1005_v14  ;;  %v360_v13 = vld [vmem:[#allocation3 + $0x30] sm:$0xff] }
  0x91   : > { %666 = vmatmul.bf16.gmra.mxu1 %v977_v15  ;;  %686 = vmatmul.bf16.gmra.mxu3 %v1009_v16 }
  0xdd   : > { %v603_v17 = vpop.f32.mrf.mxu0 }
  0xde   : > { %v652_v19 = vpop.f32.mrf.mxu1 }
  0xdf   : > { %v653_v20 = vadd.f32 %v652_v19, %v603_v17  ;;  %v368_v19 = vld [vmem:[#allocation3 + $0x70] sm:$0xff] }
  0xe1   : > { %v692_v21 = vadd.f32 %v653_v20, %v354_v18 }
  0xe3   : > { %708 = vst [vmem:[#allocation3] sm:$0xff] %v692_v21  ;;  %v623_v22 = vpop.f32.mrf.mxu2 }
  0xe4   : > { %v672_v24 = vpop.f32.mrf.mxu3 }
  0xe5   : > { %v673_v25 = vadd.f32 %v672_v24, %v623_v22  ;;  %v605_v26 = vpop.f32.mrf.mxu0 }
  0xe6   : > { %v654_v28 = vpop.f32.mrf.mxu1 }
  0xe7   : > { %v700_v29 = vadd.f32 %v673_v25, %v362_v23  ;;  %v655_v30 = vadd.f32 %v654_v28, %v605_v26  ;;  %v361_v23 = vld [vmem:[#allocation3 + $0x38] sm:$0xff] }
  0xe9   : > { %716 = vst [vmem:[#allocation3 + $0x40] sm:$0xff] %v700_v29  ;;  %v693_v31 = vadd.f32 %v655_v30, %v355_v27  ;;  %v369_v29 = vld [vmem:[#allocation3 + $0x78] sm:$0xff] }
  0xeb   : > { %709 = vst [vmem:[#allocation3 + $0x8] sm:$0xff] %v693_v31  ;;  %v625_v32 = vpop.f32.mrf.mxu2 }
  0xec   : > { %v674_v34 = vpop.f32.mrf.mxu3 }
  0xed   : > { %v675_v35 = vadd.f32 %v674_v34, %v625_v32  ;;  %v608_v36 = vpop.f32.mrf.mxu0 }
  0xee   : > { %v657_v38 = vpop.f32.mrf.mxu1 }
  0xef   : > { %v701_v39 = vadd.f32 %v675_v35, %v363_v33  ;;  %v658_v40 = vadd.f32 %v657_v38, %v608_v36 }
  0xf1   : > { %717 = vst [vmem:[#allocation3 + $0x48] sm:$0xff] %v701_v39  ;;  %v694_v41 = vadd.f32 %v658_v40, %v356_v37 }
  0xf3   : > { %710 = vst [vmem:[#allocation3 + $0x10] sm:$0xff] %v694_v41  ;;  %v628_v42 = vpop.f32.mrf.mxu2 }
  0xf4   : > { %v677_v44 = vpop.f32.mrf.mxu3 }
  0xf5   : > { %v678_v45 = vadd.f32 %v677_v44, %v628_v42  ;;  %v610_v46 = vpop.f32.mrf.mxu0 }
  0xf6   : > { %v659_v48 = vpop.f32.mrf.mxu1 }
  0xf7   : > { %v702_v49 = vadd.f32 %v678_v45, %v364_v43  ;;  %v660_v50 = vadd.f32 %v659_v48, %v610_v46 }
  0xf9   : > { %718 = vst [vmem:[#allocation3 + $0x50] sm:$0xff] %v702_v49  ;;  %v695_v51 = vadd.f32 %v660_v50, %v357_v47 }
  0xfb   : > { %711 = vst [vmem:[#allocation3 + $0x18] sm:$0xff] %v695_v51  ;;  %v630_v52 = vpop.f32.mrf.mxu2 }
  0xfc   : > { %v679_v54 = vpop.f32.mrf.mxu3 }
  0xfd   : > { %v680_v55 = vadd.f32 %v679_v54, %v630_v52  ;;  %v613_v56 = vpop.f32.mrf.mxu0 }
  0xfe   : > { %v662_v58 = vpop.f32.mrf.mxu1 }
  0xff   : > { %v703_v59 = vadd.f32 %v680_v55, %v365_v53  ;;  %v663_v60 = vadd.f32 %v662_v58, %v613_v56 }
 0x101   : > { %719 = vst [vmem:[#allocation3 + $0x58] sm:$0xff] %v703_v59  ;;  %v696_v61 = vadd.f32 %v663_v60, %v358_v57 }
 0x103   : > { %712 = vst [vmem:[#allocation3 + $0x20] sm:$0xff] %v696_v61  ;;  %v633_v62 = vpop.f32.mrf.mxu2 }
 0x104   : > { %v682_v0 = vpop.f32.mrf.mxu3 }
 0x105   : > { %v683_v1 = vadd.f32 %v682_v0, %v633_v62  ;;  %v615_v2 = vpop.f32.mrf.mxu0 }
 0x106   : > { %v664_v4 = vpop.f32.mrf.mxu1 }
 0x107   : > { %v704_v5 = vadd.f32 %v683_v1, %v366_v63  ;;  %v665_v6 = vadd.f32 %v664_v4, %v615_v2 }
 0x109   : > { %720 = vst [vmem:[#allocation3 + $0x60] sm:$0xff] %v704_v5  ;;  %v697_v7 = vadd.f32 %v665_v6, %v359_v3 }
 0x10b   : > { %713 = vst [vmem:[#allocation3 + $0x28] sm:$0xff] %v697_v7  ;;  %v635_v8 = vpop.f32.mrf.mxu2 }
 0x10c   : > { %v684_v10 = vpop.f32.mrf.mxu3 }
 0x10d   : > { %v685_v11 = vadd.f32 %v684_v10, %v635_v8  ;;  %v618_v12 = vpop.f32.mrf.mxu0 }
 0x10e   : > { %v667_v14 = vpop.f32.mrf.mxu1 }
 0x10f   : > { %v705_v15 = vadd.f32 %v685_v11, %v367_v9  ;;  %v668_v16 = vadd.f32 %v667_v14, %v618_v12 }
 0x111   : > { %721 = vst [vmem:[#allocation3 + $0x68] sm:$0xff] %v705_v15  ;;  %v698_v17 = vadd.f32 %v668_v16, %v360_v13 }
 0x113   : > { %714 = vst [vmem:[#allocation3 + $0x30] sm:$0xff] %v698_v17  ;;  %v638_v18 = vpop.f32.mrf.mxu2 }
 0x114   : > { %v687_v20 = vpop.f32.mrf.mxu3 }
 0x115   : > { %v688_v21 = vadd.f32 %v687_v20, %v638_v18  ;;  %v620_v22 = vpop.f32.mrf.mxu0 }
 0x116   : > { %v669_v24 = vpop.f32.mrf.mxu1 }
 0x117   : > { %v706_v25 = vadd.f32 %v688_v21, %v368_v19  ;;  %v670_v26 = vadd.f32 %v669_v24, %v620_v22 }
 0x119   : > { %722 = vst [vmem:[#allocation3 + $0x70] sm:$0xff] %v706_v25  ;;  %v699_v27 = vadd.f32 %v670_v26, %v361_v23 }
 0x11b   : > { %715 = vst [vmem:[#allocation3 + $0x38] sm:$0xff] %v699_v27  ;;  %v640_v28 = vpop.f32.mrf.mxu2 }
 0x11c   : > { %v689_v30 = vpop.f32.mrf.mxu3 }
 0x11d   : > { %v690_v31 = vadd.f32 %v689_v30, %v640_v28  ;;  %727 = sbr.rel (%p1074_p11) target bundleno = 313 (0x139), region = 78 }
 0x11f   : > { %v707_v32 = vadd.f32 %v690_v31, %v369_v29 }
 0x121   : > { %723 = vst [vmem:[#allocation3 + $0x78] sm:$0xff] %v707_v32 }
 0x122   : > { %v728_v33 = vld [vmem:[#allocation3] sm:$0xff]  ;;  %v729_v35 = vld [vmem:[#allocation3 + $0x8] sm:$0xff]  ;;  %v730_v36 = vld [vmem:[#allocation3 + $0x10] sm:$0xff] }
 0x123   : > { %v1401_v34 = vld [vmem:[%s1441_s2] ss:$0 sm:$0xff]  ;;  %v731_v37 = vld [vmem:[#allocation3 + $0x18] sm:$0xff]  ;;  %v733_v43 = vld [vmem:[#allocation3 + $0x28] sm:$0xff] }
 0x124   : > { %v748_v38 = vadd.f32 %v1401_v34, %v728_v33  ;;  %v749_v39 = vadd.f32 %v1401_v34, %v729_v35  ;;  %v750_v40 = vadd.f32 %v1401_v34, %v730_v36  ;;  %v751_v41 = vadd.f32 %v1401_v34, %v731_v37  ;;  %v732_v42 = vld [vmem:[#allocation3 + $0x20] sm:$0xff]  ;;  %v734_v44 = vld [vmem:[#allocation3 + $0x30] sm:$0xff]  ;;  %v735_v48 = vld [vmem:[#allocation3 + $0x38] sm:$0xff] }
 0x125   : > { %v752_v45 = vadd.f32 %v1401_v34, %v732_v42  ;;  %v753_v46 = vadd.f32 %v1401_v34, %v733_v43  ;;  %v754_v47 = vadd.f32 %v1401_v34, %v734_v44  ;;  %v736_v56 = vld [vmem:[#allocation3 + $0x40] sm:$0xff]  ;;  %v737_v57 = vld [vmem:[#allocation3 + $0x48] sm:$0xff]  ;;  %v738_v58 = vld [vmem:[#allocation3 + $0x50] sm:$0xff]  ;;  %v755_v1 = vadd.f32 %v1401_v34, %v735_v48 }
 0x126   : > { %vm764_vm0 = vcmp.ge.f32.partialorder %v748_v38, 0.0  ;;  %v780_v49 = vmul.f32 0.01, %v748_v38  ;;  %vm765_vm1 = vcmp.ge.f32.partialorder %v749_v39, 0.0  ;;  %v781_v50 = vmul.f32 0.01, %v749_v39 }
 0x127   : > { %vm766_vm2 = vcmp.ge.f32.partialorder %v750_v40, 0.0  ;;  %v782_v51 = vmul.f32 0.01, %v750_v40  ;;  %vm767_vm3 = vcmp.ge.f32.partialorder %v751_v41, 0.0  ;;  %v783_v52 = vmul.f32 0.01, %v751_v41 }
 0x128   : > { %v796_v53 = vsel %vm764_vm0, %v748_v38, %v780_v49  ;;  %v797_v54 = vsel %vm765_vm1, %v749_v39, %v781_v50  ;;  %vm768_vm4 = vcmp.ge.f32.partialorder %v752_v45, 0.0  ;;  %v784_v55 = vmul.f32 0.01, %v752_v45  ;;  %v739_v62 = vld [vmem:[#allocation3 + $0x58] sm:$0xff]  ;;  %v740_v6 = vld [vmem:[#allocation3 + $0x60] sm:$0xff]  ;;  %v741_v7 = vld [vmem:[#allocation3 + $0x68] sm:$0xff] }
 0x129   : > { %812 = vst [vmem:[#allocation3] sm:$0xff] %v796_v53  ;;  %v798_v59 = vsel %vm766_vm2, %v750_v40, %v782_v51  ;;  %v799_v60 = vsel %vm767_vm3, %v751_v41, %v783_v52  ;;  %vm769_vm5 = vcmp.ge.f32.partialorder %v753_v46, 0.0  ;;  %v785_v61 = vmul.f32 0.01, %v753_v46  ;;  %v742_v11 = vld [vmem:[#allocation3 + $0x70] sm:$0xff]  ;;  %v743_v12 = vld [vmem:[#allocation3 + $0x78] sm:$0xff] }
 0x12a   : > { %813 = vst [vmem:[#allocation3 + $0x8] sm:$0xff] %v797_v54  ;;  %v800_v63 = vsel %vm768_vm4, %v752_v45, %v784_v55  ;;  %vm770_vm6 = vcmp.ge.f32.partialorder %v754_v47, 0.0  ;;  %v786_v0 = vmul.f32 0.01, %v754_v47  ;;  %v756_v3 = vadd.f32 %v1401_v34, %v736_v56 }
 0x12b   : > { %814 = vst [vmem:[#allocation3 + $0x10] sm:$0xff] %v798_v59  ;;  %v801_v2 = vsel %vm769_vm5, %v753_v46, %v785_v61  ;;  %v757_v4 = vadd.f32 %v1401_v34, %v737_v57  ;;  %v758_v5 = vadd.f32 %v1401_v34, %v738_v58  ;;  %vm771_vm7 = vcmp.ge.f32.partialorder %v755_v1, 0.0 }
 0x12c   : > { %815 = vst [vmem:[#allocation3 + $0x18] sm:$0xff] %v799_v60  ;;  %v802_v8 = vsel %vm770_vm6, %v754_v47, %v786_v0  ;;  %v787_v9 = vmul.f32 0.01, %v755_v1  ;;  %v759_v10 = vadd.f32 %v1401_v34, %v739_v62  ;;  %vm772_vm8 = vcmp.ge.f32.partialorder %v756_v3, 0.0 }
 0x12d   : > { %816 = vst [vmem:[#allocation3 + $0x20] sm:$0xff] %v800_v63  ;;  %v788_v13 = vmul.f32 0.01, %v756_v3  ;;  %vm773_vm9 = vcmp.ge.f32.partialorder %v757_v4, 0.0  ;;  %vm774_vm10 = vcmp.ge.f32.partialorder %v758_v5, 0.0  ;;  %v760_v19 = vadd.f32 %v1401_v34, %v740_v6 }
 0x12e   : > { %817 = vst [vmem:[#allocation3 + $0x28] sm:$0xff] %v801_v2  ;;  %v803_v14 = vsel %vm771_vm7, %v755_v1, %v787_v9  ;;  %v789_v15 = vmul.f32 0.01, %v757_v4  ;;  %v790_v16 = vmul.f32 0.01, %v758_v5  ;;  %vm775_vm11 = vcmp.ge.f32.partialorder %v759_v10, 0.0 }
 0x12f   : > { %818 = vst [vmem:[#allocation3 + $0x30] sm:$0xff] %v802_v8  ;;  %v804_v17 = vsel %vm772_vm8, %v756_v3, %v788_v13  ;;  %v791_v18 = vmul.f32 0.01, %v759_v10  ;;  %v761_v20 = vadd.f32 %v1401_v34, %v741_v7  ;;  %v762_v23 = vadd.f32 %v1401_v34, %v742_v11 }
 0x130   : > { %819 = vst [vmem:[#allocation3 + $0x38] sm:$0xff] %v803_v14  ;;  %v805_v21 = vsel %vm773_vm9, %v757_v4, %v789_v15  ;;  %v806_v22 = vsel %vm774_vm10, %v758_v5, %v790_v16  ;;  %v763_v24 = vadd.f32 %v1401_v34, %v743_v12  ;;  %vm776_vm12 = vcmp.ge.f32.partialorder %v760_v19, 0.0 }
 0x131   : > { %820 = vst [vmem:[#allocation3 + $0x40] sm:$0xff] %v804_v17  ;;  %v807_v25 = vsel %vm775_vm11, %v759_v10, %v791_v18  ;;  %v792_v26 = vmul.f32 0.01, %v760_v19  ;;  %vm777_vm13 = vcmp.ge.f32.partialorder %v761_v20, 0.0  ;;  %v793_v27 = vmul.f32 0.01, %v761_v20 }
 0x132   : > { %821 = vst [vmem:[#allocation3 + $0x48] sm:$0xff] %v805_v21  ;;  %vm778_vm14 = vcmp.ge.f32.partialorder %v762_v23, 0.0  ;;  %v794_v28 = vmul.f32 0.01, %v762_v23  ;;  %vm779_vm15 = vcmp.ge.f32.partialorder %v763_v24, 0.0 }
 0x133   : > { %822 = vst [vmem:[#allocation3 + $0x50] sm:$0xff] %v806_v22  ;;  %v808_v29 = vsel %vm776_vm12, %v760_v19, %v792_v26  ;;  %v795_v30 = vmul.f32 0.01, %v763_v24  ;;  %v809_v31 = vsel %vm777_vm13, %v761_v20, %v793_v27 }
 0x134   : > { %823 = vst [vmem:[#allocation3 + $0x58] sm:$0xff] %v807_v25  ;;  %v810_v32 = vsel %vm778_vm14, %v762_v23, %v794_v28 }
 0x135   : > { %824 = vst [vmem:[#allocation3 + $0x60] sm:$0xff] %v808_v29  ;;  %v811_v33 = vsel %vm779_vm15, %v763_v24, %v795_v30 }
 0x136   : > { %825 = vst [vmem:[#allocation3 + $0x68] sm:$0xff] %v809_v31 }
 0x137   : > { %826 = vst [vmem:[#allocation3 + $0x70] sm:$0xff] %v810_v32 }
 0x138   : > { %827 = vst [vmem:[#allocation3 + $0x78] sm:$0xff] %v811_v33 }
 0x139 PF: > { %p1132_p12 = scmp.eq.s32.totalorder %s934_s17, 4  ;;  %s839_s19 = sshll.u32 %s1442_s3, 4  ;;  %s840_s19 = int_to_ptr.hbm [resolvable:$true] %s839_s19 }
 0x13a   : > { %s1252_s20 = smov [#allocation3]   ;;  %s1253_s23 = smov 128  }
 0x13b   : > { %s837_s22 = sshll.u32 %s1252_s20, 4  ;;  %s1254_s24 = smov 8   ;;  %s838_s22 = int_to_ptr.vmem [resolvable:$true] %s837_s22 }
 0x13c   : > { %1129 = dma.vmem_to_hbm [thread:$0]  (%p1132_p12), %s838_s22, 2048, %s840_s19, [#allocation4], %s1253_s23, %s1253_s23, %s1254_s24  }
 0x13d   : > { %1228 = dma.done.wait (%p1132_p12), [#allocation4], 2048  }
 0x13e   : > { %1230 = vsyncadd (%p1132_p12), [#allocation4], 4294965248 }
 0x13f PF: > { %s14_s16 = sadd.s32 1, %s1249_s16   ;;  %s1443_s12 = smov %s1237_s13 }
 0x140   : > { %p11_p13 = scmp.ge.s32.totalorder %s14_s16, 7   ;;  %s1444_s13 = smov %s1311_s21 }
 0x141   : > { %s1445_s14 = smov %s1245_s15  ;;  %s1446_s15 = smov %s1448_s18 }
 0x142   :  { %13 = sbr.rel (!%p11_p13) target bundleno = 3 (0x3), region = 117 }
 0x147   :  { %856 = vsyncpa [#allocation4], 1 }
 0x148   :  { %858 = vsyncpa [#allocation4 + $0x1], 1 }

</bundles_post_ra>
